<compile_context>
chip_gen: v5e
topology: v5e:2x2
jax: 0.10.0
libtpu: 0.0.40
codegen_flags: <defaults>
</compile_context>

<pallas_src>
import functools
import re

import jax
import jax.numpy as jnp
from jax import lax
from jax.experimental import pallas as pl
from jax.experimental.pallas import tpu as pltpu

LANES = 128        # lane width
ACC_ROWS = 8       # sublane-aligned accumulator rows (one f32 vreg)
CHUNK_ROWS = 64    # rows streamed per inner-loop step (8 vregs per input)


def _round_down(x, m):
    return (x // m) * m


def _device_kind():
    try:
        return jax.devices()[0].device_kind.lower()
    except Exception:
        return ""


def _tpu_generation():
    m = re.search(r"(\d+)", _device_kind())
    return int(m.group(1)) if m else 6


def _num_tensorcores(gen):
    # v7x has 2 TensorCores per chip; v5e/v6e (and older) have 1.
    return 2 if gen >= 7 else 1


def _quad_sum(pred, true, kappa):
    """Branch-free Huber/Tukey term, summed (identical to where-form for all kappa)."""
    err = pred.astype(jnp.float32) - true.astype(jnp.float32)
    abs_e = jnp.abs(err)
    t = jnp.minimum(abs_e, jnp.float32(kappa))
    return jnp.sum(t * (abs_e - 0.5 * t))


def _tukey_sum_kernel(pred_ref, true_ref, out_ref, *, kappa, tile_rows,
                      chunk_rows, blocks_per_core, nblocks, has_partial,
                      has_dup, valid_rows_last):
    c = pl.program_id(0)   # "core" axis (parallel)
    j = pl.program_id(1)   # reduction axis (arbitrary)
    block_idx = c * blocks_per_core + j

    @pl.when(j == 0)
    def _():
        out_ref[...] = jnp.zeros_like(out_ref)

    n_chunks = tile_rows // chunk_rows
    n_groups = chunk_rows // ACC_ROWS
    kappa_f = jnp.float32(kappa)

    def tile_sum(mask_rows_lt):
        # Stream the tile in (chunk_rows, 128) slabs; reduce each slab straight
        # into an (8, 128) f32 vreg accumulator (no full-tile materialization).
        def chunk_body(i, acc):
            r0 = pl.multiple_of(i * chunk_rows, chunk_rows)
            p = pred_ref[pl.ds(r0, chunk_rows), :].astype(jnp.float32)
            t = true_ref[pl.ds(r0, chunk_rows), :].astype(jnp.float32)
            abs_e = jnp.abs(p - t)
            tmin = jnp.minimum(abs_e, kappa_f)
            quad = tmin * (abs_e - 0.5 * tmin)
            if mask_rows_lt is not None:
                # Only the single partial last block pays this mask.
                row_ids = r0 + lax.broadcasted_iota(jnp.int32, quad.shape, 0)
                quad = jnp.where(row_ids < mask_rows_lt, quad, 0.0)
            groups = [quad[g * ACC_ROWS:(g + 1) * ACC_ROWS, :]
                      for g in range(n_groups)]
            while len(groups) > 1:
                nxt = [a + b for a, b in zip(groups[0::2], groups[1::2])]
                if len(groups) % 2:
                    nxt.append(groups[-1])
                groups = nxt
            return acc + groups[0]

        return lax.fori_loop(0, n_chunks, chunk_body,
                             jnp.zeros((ACC_ROWS, LANES), jnp.float32))

    if has_partial or has_dup:
        n_full = nblocks - 1 if has_partial else nblocks

        @pl.when(block_idx < n_full)
        def _():
            out_ref[...] += tile_sum(None)

        if has_partial:
            @pl.when(block_idx == nblocks - 1)
            def _():
                out_ref[...] += tile_sum(valid_rows_last)
        # block_idx >= nblocks (clamped duplicate block): no accumulation.
    else:
        out_ref[...] += tile_sum(None)


def tukey_loss(y_pred, y_true, kappa=1.0):
    """Pallas TPU implementation of TukeyLoss.forward. Returns a scalar f32."""
    assert y_pred.shape == y_true.shape, "y_pred / y_true must match in shape"
    n = int(y_pred.size)
    if n == 0:
        return jnp.float32(0.0)
    kappa = float(kappa)

    pred = jnp.ravel(y_pred)
    true = jnp.ravel(y_true)

    rows = n // LANES
    n_main = rows * LANES

    gen = _tpu_generation()
    itemsize = max(jnp.dtype(y_pred.dtype).itemsize, jnp.dtype(y_true.dtype).itemsize)
    # Per-input block byte budget: 2 inputs x 2 pipeline buffers stay within
    # ~half of the default scoped VMEM (16 MiB on v5e, 32 MiB on v6e/v7x).
    block_budget = (2 << 20) if gen <= 5 else (4 << 20)
    target_rows = max(CHUNK_ROWS,
                      _round_down(block_budget // (LANES * itemsize), CHUNK_ROWS))

    total = jnp.float32(0.0)

    # Ragged (<128-element) tail: tiny wrapper-side epilogue (no jnp.pad copy,
    # no per-block lane masking in the kernel).
    if n_main < n:
        total = total + _quad_sum(pred[n_main:], true[n_main:], kappa)

    if rows >= ACC_ROWS:
        if rows >= CHUNK_ROWS:
            tile_rows = min(target_rows, _round_down(rows, CHUNK_ROWS))
            chunk_rows = CHUNK_ROWS
        else:
            tile_rows = _round_down(rows, ACC_ROWS)
            chunk_rows = tile_rows

        if n_main < n:
            # Lane-misaligned input: kernel works on the aligned prefix.
            # TODO(synk): this prefix slice is still one HBM copy per input; a
            # manual-DMA (memory_space=pl.ANY) variant could stream the flat
            # buffer directly if misaligned sizes matter in production.
            pred_main = pred[:n_main]
            true_main = true[:n_main]
        else:
            pred_main = pred
            true_main = true
        pred2d = pred_main.reshape(rows, LANES)
        true2d = true_main.reshape(rows, LANES)

        nblocks = pl.cdiv(rows, tile_rows)
        num_cores = _num_tensorcores(gen)
        if num_cores > 1 and pl.cdiv(nblocks, num_cores) < 4:
            num_cores = 1  # too few blocks to feed a second core's pipeline
        blocks_per_core = pl.cdiv(nblocks, num_cores)

        has_partial = (rows % tile_rows) != 0
        valid_rows_last = rows - (nblocks - 1) * tile_rows
        has_dup = num_cores * blocks_per_core > nblocks

        if has_dup:
            # Clamp out-of-range block indices to the last real block; the
            # runtime gate in the kernel skips their accumulation.
            last = nblocks - 1
            idx_map = lambda c, j: (jnp.minimum(c * blocks_per_core + j, last), 0)
        else:
            idx_map = lambda c, j: (c * blocks_per_core + j, 0)

        kernel = functools.partial(
            _tukey_sum_kernel, kappa=kappa, tile_rows=tile_rows,
            chunk_rows=chunk_rows, blocks_per_core=blocks_per_core,
            nblocks=nblocks, has_partial=has_partial, has_dup=has_dup,
            valid_rows_last=valid_rows_last)

        partials = pl.pallas_call(
            kernel,
            out_shape=jax.ShapeDtypeStruct((num_cores * ACC_ROWS, LANES),
                                           jnp.float32),
            grid_spec=pltpu.PrefetchScalarGridSpec(
                num_scalar_prefetch=0,
                grid=(num_cores, blocks_per_core),
                in_specs=[
                    pl.BlockSpec((tile_rows, LANES), idx_map),
                    pl.BlockSpec((tile_rows, LANES), idx_map),
                ],
                out_specs=pl.BlockSpec((ACC_ROWS, LANES), lambda c, j: (c, 0)),
            ),
            compiler_params=pltpu.CompilerParams(
                dimension_semantics=("parallel", "arbitrary"),
                vmem_limit_bytes=32 * 1024 * 1024,
            ),
        )(pred2d, true2d)
        total = total + jnp.sum(partials)
    elif rows > 0:
        # Fewer than 8 full rows (< 1024 elements): negligible; plain JAX.
        total = total + _quad_sum(pred[:n_main], true[:n_main], kappa)

    return (total / jnp.float32(n)).astype(jnp.float32)


def _reference(y_pred, y_true, kappa=1.0):
    err = y_pred.astype(jnp.float32) - y_true.astype(jnp.float32)
    abs_e = jnp.abs(err)
    quad = jnp.where(abs_e < kappa, 0.5 * err * err, kappa * (abs_e - 0.5 * kappa))
    return jnp.mean(quad)


if __name__ == "__main__":
    key = jax.random.PRNGKey(0)

    cases = [
        ((2, 4, 16, 16), 1.0),    # spec-like NCHW tensor, lane-aligned (kernel path)
        ((5, 3, 97), 0.7),        # misaligned: small rows + ragged tail epilogue
        ((4, 3, 129, 67), 1.3),   # misaligned: multi-chunk + gated partial block
        ((8, 8, 64, 64), 1.0),    # aligned: pure streaming path, no masks
    ]

    for shape, kappa in cases:
        key, k1, k2 = jax.random.split(key, 3)
        y_pred = jax.random.normal(k1, shape, dtype=jnp.float32) * 2.0
        y_true = jax.random.normal(k2, shape, dtype=jnp.float32) * 2.0

        loss = tukey_loss(y_pred, y_true, kappa=kappa)
        jax.block_until_ready(loss)

        ref = _reference(y_pred, y_true, kappa=kappa)
        assert jnp.allclose(loss, ref, rtol=1e-5, atol=1e-5), (
            shape, float(loss), float(ref))

    print("KERNEL_OK")
</pallas_src>

<mosaic_0001>
module attributes {stable_mosaic.version = 11 : i64} {
  func.func @_tukey_sum_kernel(%arg0: i32, %arg1: i32, %arg2: memref<16x128xf32, #tpu.memory_space<vmem>>, %arg3: memref<16x128xf32, #tpu.memory_space<vmem>>, %arg4: memref<8x128xf32, #tpu.memory_space<vmem>>) attributes {dimension_semantics = [#tpu.dimension_semantics<parallel>, #tpu.dimension_semantics<arbitrary>], iteration_bounds = array<i64: 1, 1>, scalar_prefetch = 0 : i64, scratch_operands = 0 : i64, tpu.core_type = #tpu.core_type<tc>, window_params = [{transform_indices = @transform_0, window_bounds = array<i64: 16, 128>}, {transform_indices = @transform_1, window_bounds = array<i64: 16, 128>}, {transform_indices = @transform_2, window_bounds = array<i64: 8, 128>}]} {
    %c0_i32 = arith.constant 0 : i32
    %0 = arith.cmpi eq, %arg1, %c0_i32 : i32
    %1 = arith.extui %0 : i1 to i32
    %c0_i32_0 = arith.constant 0 : i32
    %2 = arith.cmpi ne, %1, %c0_i32_0 : i32
    scf.if %2 {
      %cst_9 = arith.constant 0.000000e+00 : f32
      %25 = vector.broadcast %cst_9 : f32 to vector<8x128xf32>
      %c0_10 = arith.constant 0 : index
      %c0_11 = arith.constant 0 : index
      %26 = vector.load %arg4[%c0_10, %c0_11] : memref<8x128xf32, #tpu.memory_space<vmem>>, vector<8x128xf32>
      tpu.vector_store %arg4[%c0_10, %c0_11], %25 {strides = array<i32>} : memref<8x128xf32, #tpu.memory_space<vmem>>, vector<8x128xf32>,
    } else {
    }
    %c0 = arith.constant 0 : index
    %c0_1 = arith.constant 0 : index
    %3 = vector.load %arg4[%c0, %c0_1] : memref<8x128xf32, #tpu.memory_space<vmem>>, vector<8x128xf32>
    %cst = arith.constant 0.000000e+00 : f32
    %4 = vector.broadcast %cst : f32 to vector<8x128xf32>
    %cst_2 = arith.constant 1.000000e+00 : f32
    %c0_i32_3 = arith.constant 0 : i32
    %c16_i32 = arith.constant 16 : i32
    %5 = arith.muli %c0_i32_3, %c16_i32 : i32
    %6 = tpu.assume_multiple %5, 16 : i32
    %7 = arith.index_cast %6 : i32 to index
    %c0_4 = arith.constant 0 : index
    %8 = vector.load %arg2[%7, %c0_4] : memref<16x128xf32, #tpu.memory_space<vmem>>, vector<16x128xf32>
    %9 = arith.index_cast %6 : i32 to index
    %c0_5 = arith.constant 0 : index
    %10 = vector.load %arg3[%9, %c0_5] : memref<16x128xf32, #tpu.memory_space<vmem>>, vector<16x128xf32>
    %11 = arith.subf %8, %10 : vector<16x128xf32>
    %12 = math.absf %11 : vector<16x128xf32>
    %13 = vector.broadcast %cst_2 : f32 to vector<16x128xf32>
    %14 = arith.minimumf %12, %13 : vector<16x128xf32>
    %cst_6 = arith.constant 5.000000e-01 : f32
    %15 = vector.broadcast %cst_6 : f32 to vector<16x128xf32>
    %16 = arith.mulf %15, %14 : vector<16x128xf32>
    %17 = arith.subf %12, %16 : vector<16x128xf32>
    %18 = arith.mulf %14, %17 : vector<16x128xf32>
    %19 = vector.extract_strided_slice %18 {offsets = [0, 0], sizes = [8, 128], strides = [1, 1]} : vector<16x128xf32> to vector<8x128xf32>
    %20 = vector.extract_strided_slice %18 {offsets = [8, 0], sizes = [8, 128], strides = [1, 1]} : vector<16x128xf32> to vector<8x128xf32>
    %21 = arith.addf %19, %20 : vector<8x128xf32>
    %22 = arith.addf %4, %21 : vector<8x128xf32>
    %c1_i32 = arith.constant 1 : i32
    %23 = arith.addf %3, %22 : vector<8x128xf32>
    %c0_7 = arith.constant 0 : index
    %c0_8 = arith.constant 0 : index
    %24 = vector.load %arg4[%c0_7, %c0_8] : memref<8x128xf32, #tpu.memory_space<vmem>>, vector<8x128xf32>
    tpu.vector_store %arg4[%c0_7, %c0_8], %23 {strides = array<i32>} : memref<8x128xf32, #tpu.memory_space<vmem>>, vector<8x128xf32>,
    return
  }
  func.func @transform_0(%arg0: i32, %arg1: i32) -> (i32, i32) {
    %c1_i32 = arith.constant 1 : i32
    %0 = arith.muli %arg0, %c1_i32 : i32
    %1 = arith.addi %0, %arg1 : i32
    %c0_i32 = arith.constant 0 : i32
    %c0_i32_0 = arith.constant 0 : i32
    return %1, %c0_i32 : i32, i32
  }
  func.func @transform_1(%arg0: i32, %arg1: i32) -> (i32, i32) {
    %c1_i32 = arith.constant 1 : i32
    %0 = arith.muli %arg0, %c1_i32 : i32
    %1 = arith.addi %0, %arg1 : i32
    %c0_i32 = arith.constant 0 : i32
    %c0_i32_0 = arith.constant 0 : i32
    return %1, %c0_i32 : i32, i32
  }
  func.func @transform_2(%arg0: i32, %arg1: i32) -> (i32, i32) {
    %c0_i32 = arith.constant 0 : i32
    %c0_i32_0 = arith.constant 0 : i32
    return %arg0, %c0_i32 : i32, i32
  }
}

</mosaic_0001>

<bundles_post_ra>
// kernel: tpu_custom_call.1
= control target key start
LH: loop header
LB: loop body
LE: loop exit
PB: predicated region body
PF: predicated region fallthrough
CT: control target
= control target key end

     0   :  { %7 = vsyncpa [#allocation3], 0  ;;  %s213_s0 = inlined_call_operand.hbm [shape: f32[16,128], index: 0, kind: input, shape index: {}]   ;;  %s214_s1 = inlined_call_operand.hbm [shape: f32[16,128], index: 1, kind: input, shape index: {}]   ;;  %s215_s2 = inlined_call_operand.hbm [shape: f32[8,128], index: 2, kind: output, shape index: {}]  }
   0x1   :  { %8 = vsyncpa [#allocation6], 0 }
   0x2   :  { %9 = vsyncpa [#allocation4], 0  ;;  %s18_s11 = sshll.u32 %s213_s0, 4  ;;  %s184_s12 = smov [#allocation2]   ;;  %s19_s11 = int_to_ptr.hbm [resolvable:$true] %s18_s11 }
   0x3   :  { %s20_s13 = sshll.u32 %s184_s12, 4  ;;  %s35_s16 = sshll.u32 %s214_s1, 4  ;;  %s21_s13 = int_to_ptr.vmem [resolvable:$true] %s20_s13  ;;  %s36_s16 = int_to_ptr.hbm [resolvable:$true] %s35_s16 }
   0x4   :  { %s185_s17 = smov 128   ;;  %s186_s18 = smov 8  }
   0x5   :  { %26 = dma.hbm_to_vmem [thread:$0]  %s19_s11, 256, %s21_s13, [#allocation3], %s185_s17, %s185_s17, %s186_s18  }
   0x6   :  { %s187_s19 = smov [#allocation5]  }
   0x7   :  { %s37_s20 = sshll.u32 %s187_s19, 4  ;;  %s38_s20 = int_to_ptr.vmem [resolvable:$true] %s37_s20 }
   0x8   :  { %43 = dma.hbm_to_vmem [thread:$0]  %s36_s16, 256, %s38_s20, [#allocation6], %s185_s17, %s185_s17, %s186_s18  }
   0x9   :  { %178 = dma.done.wait [#allocation3], 256  }
   0xa   :  { %179 = vsyncadd [#allocation3], 4294967040 }
   0xb   :  { %180 = dma.done.wait [#allocation6], 256  }
   0xc   :  { %181 = vsyncadd [#allocation6], 4294967040  ;;  %v62_v0 = vld [vmem:[#allocation2] sm:$0xff]  ;;  %v63_v1 = vld [vmem:[#allocation2 + $0x8] sm:$0xff]  ;;  %s188_s0 = smov [#allocation7]   ;;  %s89_s23 = sshll.u32 %s215_s2, 4  ;;  %s90_s23 = int_to_ptr.hbm [resolvable:$true] %s89_s23 }
   0xd   :  { %v64_v2 = vld [vmem:[#allocation5] sm:$0xff]  ;;  %v65_v3 = vld [vmem:[#allocation5 + $0x8] sm:$0xff]  ;;  %s87_s1 = sshll.u32 %s188_s0, 4  ;;  %s88_s1 = int_to_ptr.vmem [resolvable:$true] %s87_s1 }
   0xe   :  { %v66_v4 = vsub.f32 %v62_v0, %v64_v2  ;;  %v67_v5 = vsub.f32 %v63_v1, %v65_v3 }
  0x10   :  { %v68_v6 = vand.u32 2147483647, %v66_v4  ;;  %v69_v7 = vand.u32 2147483647, %v67_v5 }
  0x12   :  { %v70_v8 = vmin.f32 %v68_v6, 1.0  ;;  %v71_v9 = vmin.f32 %v69_v7, 1.0 }
  0x14   :  { %v72_v10 = vmul.f32 0.5, %v70_v8  ;;  %v73_v11 = vmul.f32 0.5, %v71_v9 }
  0x16   :  { %v74_v12 = vsub.f32 %v68_v6, %v72_v10  ;;  %v75_v13 = vsub.f32 %v69_v7, %v73_v11 }
  0x18   :  { %v76_v14 = vmul.f32 %v74_v12, %v70_v8  ;;  %v77_v15 = vmul.f32 %v75_v13, %v71_v9 }
  0x1a   :  { %v78_v16 = vadd.f32 %v77_v15, %v76_v14 }
  0x1c   :  { %81 = vst [vmem:[#allocation7] sm:$0xff] %v78_v16 }
  0x1d   :  { %92 = dma.vmem_to_hbm [thread:$0]  %s88_s1, 128, %s90_s23, [#allocation4]  }
  0x1e   :  { %182 = dma.done.wait [#allocation4], 128  }
  0x1f   :  { %183 = vsyncadd [#allocation4], 4294967168 }
  0x20   :  { %97 = vsyncpa [#allocation3], 1 }
  0x21   :  { %98 = vsyncpa [#allocation6], 1 }
  0x22   :  { %99 = vsyncpa [#allocation4], 1 }

</bundles_post_ra>
